<compile_context>
chip_gen: v7x
topology: tpu7x:2x2x1
jax: 0.10.0
libtpu: 0.0.40
codegen_flags: <defaults>
</compile_context>

<pallas_src>
import functools

import jax
import jax.numpy as jnp
from jax.experimental import pallas as pl
from jax.experimental.pallas import tpu as pltpu


def _round_up(n, m):
    return ((n + m - 1) // m) * m


def _device_kind():
    try:
        return jax.devices()[0].device_kind.lower()
    except Exception:
        return ""


def _vmem_capacity_bytes():
    try:
        return int(pltpu.get_tpu_info().vmem_capacity_bytes)
    except Exception:
        # Conservative fallback by generation (v7x: 64 MiB, older: 128 MiB).
        return (64 if "v7" in _device_kind() else 128) * 1024 * 1024


def _vae_kernel(x_ref, eps_ref,
                w1e_ref, b1e_ref,
                wmv_ref, bmv_ref,
                w1d_ref, b1d_ref,
                w2d_ref, b2d_ref,
                y_ref, muvar_ref,
                *, lpad):
    mm_dtype = w1e_ref.dtype  # weights were pre-cast once in the wrapper

    def mm(a, w_ref):
        # Operands in mm_dtype, accumulation in f32 on the MXU.
        return jnp.dot(a.astype(mm_dtype), w_ref[...],
                       preferred_element_type=jnp.float32)

    x = x_ref[...]  # already in mm_dtype (pre-cast in wrapper)

    # ----- Encoder -----
    h = jnp.tanh(mm(x, w1e_ref) + b1e_ref[...])
    # Fused mu || log_var head: one matmul, one lane-dense [TB, 2*Lpad] slab.
    muvar = mm(h, wmv_ref) + bmv_ref[...]
    mu = muvar[:, :lpad]
    log_var = muvar[:, lpad:]

    # ----- Reparameterize: z = mu + exp(0.5 * log_var) * eps -----
    z = mu + jnp.exp(0.5 * log_var) * eps_ref[...]

    # ----- Decoder -----
    hd = jnp.tanh(mm(z, w1d_ref) + b1d_ref[...])
    logits = mm(hd, w2d_ref) + b2d_ref[...]
    # sigmoid(v) == 0.5*(tanh(0.5*v)+1): single EUP push (vs exp + divide).
    y = 0.5 * (jnp.tanh(0.5 * logits) + 1.0)

    y_ref[...] = y
    muvar_ref[...] = muvar


@functools.partial(jax.jit, static_argnames=("block_b", "matmul_dtype"))
def vae_forward(x, eps, params, *, block_b=512, matmul_dtype=None):
    """Full VAE forward pass in one fused, batch-tiled Pallas kernel.

    x:      [B, input_size]  float32
    eps:    [B, latent_dim]  float32 (standard-normal noise; torch.randn is
                                      external randomness so it is an input)
    params: dict of pre-transposed weights ([in, out]) and biases ([1, out]).
    Returns (y, mu, log_var) with the original (unpadded) shapes.
    """
    kind = _device_kind()
    if matmul_dtype is None:
        # bf16 operands (f32 accumulation) on bf16-native MXUs; f32 otherwise.
        matmul_dtype = jnp.bfloat16 if ("v6" in kind or "v7" in kind) else jnp.float32
    mm_dtype = jnp.dtype(matmul_dtype)
    w_item = mm_dtype.itemsize

    B, input_size = x.shape
    hidden_size = params["w1e"].shape[1]
    latent_dim = params["wmu"].shape[1]
    output_size = params["w2d"].shape[1]

    # ---- Lane-pad every feature dimension to a multiple of 128. ----
    Ipad = _round_up(input_size, 128)
    Hpad = _round_up(hidden_size, 128)
    Lpad = _round_up(latent_dim, 128)
    Opad = _round_up(output_size, 128)

    # ---- Generation-aware VMEM budget. ----
    vmem_budget = int(0.85 * _vmem_capacity_bytes())

    weight_bytes = w_item * (Ipad * Hpad + Hpad * 2 * Lpad + Lpad * Hpad + Hpad * Opad)
    bias_bytes = 4 * (2 * Hpad + 2 * Lpad + Opad)

    def est_vmem(tb):
        # Single-buffered resident weights/biases (Buffered(1)).
        total = weight_bytes + bias_bytes
        # Double-buffered activation input tiles (x in mm_dtype, eps in f32).
        total += 2 * tb * (w_item * Ipad + 4 * Lpad)
        # Double-buffered output tiles (y, mu||logvar), f32.
        total += 2 * 4 * tb * (Opad + 2 * Lpad)
        # In-body intermediates: h, hd (f32 Hpad), muvar (2*Lpad), z (Lpad),
        # logits/y (Opad) + mm_dtype copies of h/z/hd feeding the MXU.
        total += 4 * tb * (2 * Hpad + 3 * Lpad + 2 * Opad)
        total += w_item * tb * (2 * Hpad + Lpad)
        # Compiler scratch / slack headroom.
        total += 8 << 20
        return total

    # ---- Batch tile: tight padding, >=2 grid steps on v7x, VMEM-fitting. ----
    n_target = max(1, pl.cdiv(B, block_b))
    TB = _round_up(pl.cdiv(B, n_target), 8)
    if "v7" in kind and pl.cdiv(_round_up(B, 8), TB) < 2 and TB >= 16:
        TB = _round_up(pl.cdiv(TB, 2), 8)   # 2 TensorCores: give each a step
    while TB > 8 and est_vmem(TB) > vmem_budget:
        TB = _round_up(max(TB // 2, 8), 8)
    pB = _round_up(B, TB)
    n_blocks = pB // TB

    # TODO(synk): when weight_bytes alone approaches vmem_budget (very large
    # hidden sizes on v7x's 64 MiB), add a hidden-dimension tiled fallback
    # (second "arbitrary" grid axis / pltpu.emit_pipeline with an f32 VMEM
    # accumulator) instead of fully resident weights.

    def pad2(a, rows, cols):
        return jnp.pad(a, ((0, rows - a.shape[0]), (0, cols - a.shape[1])))

    # Activations: x only feeds the MXU -> pre-cast; eps stays f32 (elementwise).
    x_p = pad2(x.astype(jnp.float32), pB, Ipad).astype(mm_dtype)
    eps_p = pad2(eps.astype(jnp.float32), pB, Lpad)

    # Weights pre-cast ONCE here (not per grid step in the kernel). Biases f32.
    w1e = pad2(params["w1e"], Ipad, Hpad).astype(mm_dtype)
    b1e = pad2(params["b1e"], 1, Hpad)
    wmv = jnp.concatenate(
        [pad2(params["wmu"], Hpad, Lpad), pad2(params["wvar"], Hpad, Lpad)],
        axis=1).astype(mm_dtype)
    bmv = jnp.concatenate(
        [pad2(params["bmu"], 1, Lpad), pad2(params["bvar"], 1, Lpad)], axis=1)
    w1d = pad2(params["w1d"], Lpad, Hpad).astype(mm_dtype)
    b1d = pad2(params["b1d"], 1, Hpad)
    w2d = pad2(params["w2d"], Hpad, Opad).astype(mm_dtype)
    b2d = pad2(params["b2d"], 1, Opad)

    # ---- Block specs: activations tiled over batch, weights VMEM-resident
    #      and single-buffered (constant index_map -> no double buffer). ----
    def act_spec(cols):
        return pl.BlockSpec((TB, cols), lambda i: (i, 0))

    def resident_spec(shape):
        return pl.BlockSpec(shape, lambda i: (0, 0), pipeline_mode=pl.Buffered(1))

    in_arrays = (x_p, eps_p, w1e, b1e, wmv, bmv, w1d, b1d, w2d, b2d)
    in_specs = [
        act_spec(Ipad),                   # x
        act_spec(Lpad),                   # eps
        resident_spec((Ipad, Hpad)),      # w1e
        resident_spec((1, Hpad)),         # b1e
        resident_spec((Hpad, 2 * Lpad)),  # wmu||wvar
        resident_spec((1, 2 * Lpad)),     # bmu||bvar
        resident_spec((Lpad, Hpad)),      # w1d
        resident_spec((1, Hpad)),         # b1d
        resident_spec((Hpad, Opad)),      # w2d
        resident_spec((1, Opad)),         # b2d
    ]
    out_specs = (act_spec(Opad), act_spec(2 * Lpad))
    out_shapes = (
        jax.ShapeDtypeStruct((pB, Opad), jnp.float32),      # y (padded)
        jax.ShapeDtypeStruct((pB, 2 * Lpad), jnp.float32),  # mu || log_var (padded)
    )

    vmem_limit = int(min(max(est_vmem(TB), 1 << 20), vmem_budget))

    flops = 2 * pB * (Ipad * Hpad + Hpad * 2 * Lpad + Lpad * Hpad + Hpad * Opad)
    transcendentals = pB * (2 * Hpad + Lpad + Opad)
    bytes_accessed = (weight_bytes + bias_bytes
                      + pB * (w_item * Ipad + 4 * Lpad)      # inputs
                      + 4 * pB * (Opad + 2 * Lpad))          # outputs

    kernel = functools.partial(_vae_kernel, lpad=Lpad)

    y_pad, muvar_pad = pl.pallas_call(
        kernel,
        out_shape=out_shapes,
        grid=(n_blocks,),
        in_specs=in_specs,
        out_specs=out_specs,
        compiler_params=pltpu.CompilerParams(
            dimension_semantics=("parallel",),
            vmem_limit_bytes=vmem_limit,
        ),
        cost_estimate=pl.CostEstimate(
            flops=int(flops),
            transcendentals=int(transcendentals),
            bytes_accessed=int(bytes_accessed),
        ),
    )(*in_arrays)

    y = y_pad[:B, :output_size]
    mu = muvar_pad[:B, :latent_dim]
    log_var = muvar_pad[:B, Lpad:Lpad + latent_dim]
    return y, mu, log_var


def init_params(key, input_size, hidden_size, latent_dim, output_size):
    """Deterministic synthetic parameters (torch.nn.Linear-style init, stored
    transposed as [in, out] for the kernel)."""
    ks = jax.random.split(key, 10)

    def linear(kw, kb, fan_in, fan_out):
        bound = 1.0 / jnp.sqrt(fan_in)
        w = jax.random.uniform(kw, (fan_in, fan_out), jnp.float32, -bound, bound)
        b = jax.random.uniform(kb, (1, fan_out), jnp.float32, -bound, bound)
        return w, b

    w1e, b1e = linear(ks[0], ks[1], input_size, hidden_size)
    wmu, bmu = linear(ks[2], ks[3], hidden_size, latent_dim)
    wvar, bvar = linear(ks[4], ks[5], hidden_size, latent_dim)
    w1d, b1d = linear(ks[6], ks[7], latent_dim, hidden_size)
    w2d, b2d = linear(ks[8], ks[9], hidden_size, output_size)
    return dict(w1e=w1e, b1e=b1e, wmu=wmu, bmu=bmu, wvar=wvar, bvar=bvar,
                w1d=w1d, b1d=b1d, w2d=w2d, b2d=b2d)


def vae_reference(x, eps, p):
    """Pure-JAX reference matching the PyTorch semantics."""
    h = jnp.tanh(x @ p["w1e"] + p["b1e"])
    mu = h @ p["wmu"] + p["bmu"]
    log_var = h @ p["wvar"] + p["bvar"]
    z = mu + jnp.exp(0.5 * log_var) * eps
    hd = jnp.tanh(z @ p["w1d"] + p["b1d"])
    y = jax.nn.sigmoid(hd @ p["w2d"] + p["b2d"])
    return y, mu, log_var


if __name__ == "__main__":
    # Small shapes consistent with VAE(input_size, hidden_size, latent_dim, output_size)
    B, input_size, hidden_size, latent_dim, output_size = 8, 32, 32, 16, 32

    key = jax.random.PRNGKey(0)
    k_x, k_eps, k_p = jax.random.split(key, 3)

    x = jax.random.normal(k_x, (B, input_size), jnp.float32)
    eps = jax.random.normal(k_eps, (B, latent_dim), jnp.float32)
    params = init_params(k_p, input_size, hidden_size, latent_dim, output_size)

    y_ref, mu_ref, lv_ref = vae_reference(x, eps, params)

    # --- Strict validation with f32 matmul operands ---
    y, mu, log_var = vae_forward(x, eps, params, matmul_dtype=jnp.float32)
    jax.block_until_ready((y, mu, log_var))
    assert y.shape == (B, output_size) and mu.shape == (B, latent_dim)
    assert log_var.shape == (B, latent_dim)
    assert jnp.allclose(y, y_ref, atol=1e-5), "y mismatch (f32)"
    assert jnp.allclose(mu, mu_ref, atol=1e-5), "mu mismatch (f32)"
    assert jnp.allclose(log_var, lv_ref, atol=1e-5), "log_var mismatch (f32)"

    # --- Default path (bf16 operands on v6e/v7x, f32 elsewhere); loose check ---
    y_d, mu_d, lv_d = vae_forward(x, eps, params)
    jax.block_until_ready((y_d, mu_d, lv_d))
    assert jnp.allclose(y_d, y_ref, atol=5e-2), "y mismatch (default dtype)"
    assert jnp.allclose(mu_d, mu_ref, atol=1e-1), "mu mismatch (default dtype)"
    assert jnp.allclose(lv_d, lv_ref, atol=1e-1), "log_var mismatch (default dtype)"

    # TODO(synk): optionally generate eps in-kernel with pltpu.prng_seed +
    # pltpu.prng_random_bits (Box-Muller) to drop the eps HBM input; kept as an
    # explicit input to preserve torch.randn-equivalent external randomness.

    print("KERNEL_OK")
</pallas_src>

<mosaic_0001>
module attributes {stable_mosaic.version = 11 : i64} {
  func.func @_vae_kernel(%arg0: i32, %arg1: memref<8x128xf32, #tpu.memory_space<vmem>>, %arg2: memref<8x128xf32, #tpu.memory_space<vmem>>, %arg3: memref<128x128xf32, #tpu.memory_space<vmem>>, %arg4: memref<1x128xf32, #tpu.memory_space<vmem>>, %arg5: memref<128x256xf32, #tpu.memory_space<vmem>>, %arg6: memref<1x256xf32, #tpu.memory_space<vmem>>, %arg7: memref<128x128xf32, #tpu.memory_space<vmem>>, %arg8: memref<1x128xf32, #tpu.memory_space<vmem>>, %arg9: memref<128x128xf32, #tpu.memory_space<vmem>>, %arg10: memref<1x128xf32, #tpu.memory_space<vmem>>, %arg11: memref<8x128xf32, #tpu.memory_space<vmem>>, %arg12: memref<8x256xf32, #tpu.memory_space<vmem>>) attributes {dimension_semantics = [#tpu.dimension_semantics<parallel>], iteration_bounds = array<i64: 1>, scalar_prefetch = 0 : i64, scratch_operands = 0 : i64, tpu.core_type = #tpu.core_type<tc>, window_params = [{transform_indices = @transform_0, window_bounds = array<i64: 8, 128>}, {transform_indices = @transform_1, window_bounds = array<i64: 8, 128>}, {pipeline_mode = #tpu.pipeline_mode<synchronous>, transform_indices = @transform_2, window_bounds = array<i64: 128, 128>}, {pipeline_mode = #tpu.pipeline_mode<synchronous>, transform_indices = @transform_3, window_bounds = array<i64: 1, 128>}, {pipeline_mode = #tpu.pipeline_mode<synchronous>, transform_indices = @transform_4, window_bounds = array<i64: 128, 256>}, {pipeline_mode = #tpu.pipeline_mode<synchronous>, transform_indices = @transform_5, window_bounds = array<i64: 1, 256>}, {pipeline_mode = #tpu.pipeline_mode<synchronous>, transform_indices = @transform_6, window_bounds = array<i64: 128, 128>}, {pipeline_mode = #tpu.pipeline_mode<synchronous>, transform_indices = @transform_7, window_bounds = array<i64: 1, 128>}, {pipeline_mode = #tpu.pipeline_mode<synchronous>, transform_indices = @transform_8, window_bounds = array<i64: 128, 128>}, {pipeline_mode = #tpu.pipeline_mode<synchronous>, transform_indices = @transform_9, window_bounds = array<i64: 1, 128>}, {transform_indices = @transform_10, window_bounds = array<i64: 8, 128>}, {transform_indices = @transform_11, window_bounds = array<i64: 8, 256>}]} {
    %c0 = arith.constant 0 : index
    %c0_0 = arith.constant 0 : index
    %0 = vector.load %arg1[%c0, %c0_0] : memref<8x128xf32, #tpu.memory_space<vmem>>, vector<8x128xf32>
    %c0_1 = arith.constant 0 : index
    %c0_2 = arith.constant 0 : index
    %1 = vector.load %arg3[%c0_1, %c0_2] : memref<128x128xf32, #tpu.memory_space<vmem>>, vector<128x128xf32>
    %cst = arith.constant dense<0.000000e+00> : vector<8x128xf32>
    %2 = tpu.matmul %0, %1, %cst {dimension_numbers = #tpu.dot_dimension_numbers<[1], [0], [0], [1], [0, 0, 1, 1], [], []>} : vector<8x128xf32>, vector<128x128xf32>, vector<8x128xf32> -> vector<8x128xf32>
    %c0_3 = arith.constant 0 : index
    %c0_4 = arith.constant 0 : index
    %3 = vector.load %arg4[%c0_3, %c0_4] : memref<1x128xf32, #tpu.memory_space<vmem>>, vector<1x128xf32>
    %4 = vector.broadcast %3 : vector<1x128xf32> to vector<8x128xf32>
    %5 = arith.addf %2, %4 : vector<8x128xf32>
    %6 = math.tanh %5 : vector<8x128xf32>
    %c0_5 = arith.constant 0 : index
    %c0_6 = arith.constant 0 : index
    %7 = vector.load %arg5[%c0_5, %c0_6] : memref<128x256xf32, #tpu.memory_space<vmem>>, vector<128x256xf32>
    %cst_7 = arith.constant dense<0.000000e+00> : vector<8x256xf32>
    %8 = tpu.matmul %6, %7, %cst_7 {dimension_numbers = #tpu.dot_dimension_numbers<[1], [0], [0], [1], [0, 0, 1, 1], [], []>} : vector<8x128xf32>, vector<128x256xf32>, vector<8x256xf32> -> vector<8x256xf32>
    %c0_8 = arith.constant 0 : index
    %c0_9 = arith.constant 0 : index
    %9 = vector.load %arg6[%c0_8, %c0_9] : memref<1x256xf32, #tpu.memory_space<vmem>>, vector<1x256xf32>
    %10 = vector.broadcast %9 : vector<1x256xf32> to vector<8x256xf32>
    %11 = arith.addf %8, %10 : vector<8x256xf32>
    %12 = vector.extract_strided_slice %11 {offsets = [0, 0], sizes = [8, 128], strides = [1, 1]} : vector<8x256xf32> to vector<8x128xf32>
    %13 = vector.extract_strided_slice %11 {offsets = [0, 128], sizes = [8, 128], strides = [1, 1]} : vector<8x256xf32> to vector<8x128xf32>
    %cst_10 = arith.constant 5.000000e-01 : f32
    %14 = vector.broadcast %cst_10 : f32 to vector<8x128xf32>
    %15 = arith.mulf %14, %13 : vector<8x128xf32>
    %16 = math.exp %15 : vector<8x128xf32>
    %c0_11 = arith.constant 0 : index
    %c0_12 = arith.constant 0 : index
    %17 = vector.load %arg2[%c0_11, %c0_12] : memref<8x128xf32, #tpu.memory_space<vmem>>, vector<8x128xf32>
    %18 = arith.mulf %16, %17 : vector<8x128xf32>
    %19 = arith.addf %12, %18 : vector<8x128xf32>
    %c0_13 = arith.constant 0 : index
    %c0_14 = arith.constant 0 : index
    %20 = vector.load %arg7[%c0_13, %c0_14] : memref<128x128xf32, #tpu.memory_space<vmem>>, vector<128x128xf32>
    %cst_15 = arith.constant dense<0.000000e+00> : vector<8x128xf32>
    %21 = tpu.matmul %19, %20, %cst_15 {dimension_numbers = #tpu.dot_dimension_numbers<[1], [0], [0], [1], [0, 0, 1, 1], [], []>} : vector<8x128xf32>, vector<128x128xf32>, vector<8x128xf32> -> vector<8x128xf32>
    %c0_16 = arith.constant 0 : index
    %c0_17 = arith.constant 0 : index
    %22 = vector.load %arg8[%c0_16, %c0_17] : memref<1x128xf32, #tpu.memory_space<vmem>>, vector<1x128xf32>
    %23 = vector.broadcast %22 : vector<1x128xf32> to vector<8x128xf32>
    %24 = arith.addf %21, %23 : vector<8x128xf32>
    %25 = math.tanh %24 : vector<8x128xf32>
    %c0_18 = arith.constant 0 : index
    %c0_19 = arith.constant 0 : index
    %26 = vector.load %arg9[%c0_18, %c0_19] : memref<128x128xf32, #tpu.memory_space<vmem>>, vector<128x128xf32>
    %cst_20 = arith.constant dense<0.000000e+00> : vector<8x128xf32>
    %27 = tpu.matmul %25, %26, %cst_20 {dimension_numbers = #tpu.dot_dimension_numbers<[1], [0], [0], [1], [0, 0, 1, 1], [], []>} : vector<8x128xf32>, vector<128x128xf32>, vector<8x128xf32> -> vector<8x128xf32>
    %c0_21 = arith.constant 0 : index
    %c0_22 = arith.constant 0 : index
    %28 = vector.load %arg10[%c0_21, %c0_22] : memref<1x128xf32, #tpu.memory_space<vmem>>, vector<1x128xf32>
    %29 = vector.broadcast %28 : vector<1x128xf32> to vector<8x128xf32>
    %30 = arith.addf %27, %29 : vector<8x128xf32>
    %cst_23 = arith.constant 5.000000e-01 : f32
    %31 = vector.broadcast %cst_23 : f32 to vector<8x128xf32>
    %32 = arith.mulf %31, %30 : vector<8x128xf32>
    %33 = math.tanh %32 : vector<8x128xf32>
    %cst_24 = arith.constant 1.000000e+00 : f32
    %34 = vector.broadcast %cst_24 : f32 to vector<8x128xf32>
    %35 = arith.addf %33, %34 : vector<8x128xf32>
    %cst_25 = arith.constant 5.000000e-01 : f32
    %36 = vector.broadcast %cst_25 : f32 to vector<8x128xf32>
    %37 = arith.mulf %36, %35 : vector<8x128xf32>
    %c0_26 = arith.constant 0 : index
    %c0_27 = arith.constant 0 : index
    %38 = vector.load %arg11[%c0_26, %c0_27] : memref<8x128xf32, #tpu.memory_space<vmem>>, vector<8x128xf32>
    tpu.vector_store %arg11[%c0_26, %c0_27], %37 {strides = array<i32>} : memref<8x128xf32, #tpu.memory_space<vmem>>, vector<8x128xf32>,
    %c0_28 = arith.constant 0 : index
    %c0_29 = arith.constant 0 : index
    %39 = vector.load %arg12[%c0_28, %c0_29] : memref<8x256xf32, #tpu.memory_space<vmem>>, vector<8x256xf32>
    tpu.vector_store %arg12[%c0_28, %c0_29], %11 {strides = array<i32>} : memref<8x256xf32, #tpu.memory_space<vmem>>, vector<8x256xf32>,
    return
  }
  func.func @transform_0(%arg0: i32) -> (i32, i32) {
    %c0_i32 = arith.constant 0 : i32
    %c0_i32_0 = arith.constant 0 : i32
    return %arg0, %c0_i32 : i32, i32
  }
  func.func @transform_1(%arg0: i32) -> (i32, i32) {
    %c0_i32 = arith.constant 0 : i32
    %c0_i32_0 = arith.constant 0 : i32
    return %arg0, %c0_i32 : i32, i32
  }
  func.func @transform_2(%arg0: i32) -> (i32, i32) {
    %c0_i32 = arith.constant 0 : i32
    %c0_i32_0 = arith.constant 0 : i32
    %c0_i32_1 = arith.constant 0 : i32
    return %c0_i32, %c0_i32_0 : i32, i32
  }
  func.func @transform_3(%arg0: i32) -> (i32, i32) {
    %c0_i32 = arith.constant 0 : i32
    %c0_i32_0 = arith.constant 0 : i32
    %c0_i32_1 = arith.constant 0 : i32
    return %c0_i32, %c0_i32_0 : i32, i32
  }
  func.func @transform_4(%arg0: i32) -> (i32, i32) {
    %c0_i32 = arith.constant 0 : i32
    %c0_i32_0 = arith.constant 0 : i32
    %c0_i32_1 = arith.constant 0 : i32
    return %c0_i32, %c0_i32_0 : i32, i32
  }
  func.func @transform_5(%arg0: i32) -> (i32, i32) {
    %c0_i32 = arith.constant 0 : i32
    %c0_i32_0 = arith.constant 0 : i32
    %c0_i32_1 = arith.constant 0 : i32
    return %c0_i32, %c0_i32_0 : i32, i32
  }
  func.func @transform_6(%arg0: i32) -> (i32, i32) {
    %c0_i32 = arith.constant 0 : i32
    %c0_i32_0 = arith.constant 0 : i32
    %c0_i32_1 = arith.constant 0 : i32
    return %c0_i32, %c0_i32_0 : i32, i32
  }
  func.func @transform_7(%arg0: i32) -> (i32, i32) {
    %c0_i32 = arith.constant 0 : i32
    %c0_i32_0 = arith.constant 0 : i32
    %c0_i32_1 = arith.constant 0 : i32
    return %c0_i32, %c0_i32_0 : i32, i32
  }
  func.func @transform_8(%arg0: i32) -> (i32, i32) {
    %c0_i32 = arith.constant 0 : i32
    %c0_i32_0 = arith.constant 0 : i32
    %c0_i32_1 = arith.constant 0 : i32
    return %c0_i32, %c0_i32_0 : i32, i32
  }
  func.func @transform_9(%arg0: i32) -> (i32, i32) {
    %c0_i32 = arith.constant 0 : i32
    %c0_i32_0 = arith.constant 0 : i32
    %c0_i32_1 = arith.constant 0 : i32
    return %c0_i32, %c0_i32_0 : i32, i32
  }
  func.func @transform_10(%arg0: i32) -> (i32, i32) {
    %c0_i32 = arith.constant 0 : i32
    %c0_i32_0 = arith.constant 0 : i32
    return %arg0, %c0_i32 : i32, i32
  }
  func.func @transform_11(%arg0: i32) -> (i32, i32) {
    %c0_i32 = arith.constant 0 : i32
    %c0_i32_0 = arith.constant 0 : i32
    return %arg0, %c0_i32 : i32, i32
  }
}

</mosaic_0001>

<bundles_post_ra>
// kernel: vae_forward.1
= control target key start
LH: loop header
LB: loop body
LE: loop exit
PB: predicated region body
PF: predicated region fallthrough
CT: control target
= control target key end

     0   :  { %v765_v3 = vmov 0.0|0.0   ;;  %vm766_vm0 = vmmov 0   ;;  %v767_v6 = vmov 0.0   ;;  %s1136_s0 = inlined_call_operand.vmem [shape: f32[8,128], index: 0, kind: input, shape index: {}]   ;;  %s1137_s1 = inlined_call_operand.vmem [shape: f32[8,128], index: 1, kind: input, shape index: {}]   ;;  %s1138_s2 = inlined_call_operand.vmem [shape: f32[128,128], index: 2, kind: input, shape index: {}]   ;;  %s1139_s3 = inlined_call_operand.vmem [shape: f32[1,128], index: 3, kind: input, shape index: {}]   ;;  %s1140_s4 = inlined_call_operand.vmem [shape: f32[128,256], index: 4, kind: input, shape index: {}]   ;;  %s1141_s5 = inlined_call_operand.vmem [shape: f32[1,256], index: 5, kind: input, shape index: {}]   ;;  %s1142_s6 = inlined_call_operand.vmem [shape: f32[128,128], index: 6, kind: input, shape index: {}]   ;;  %s1143_s7 = inlined_call_operand.vmem [shape: f32[1,128], index: 7, kind: input, shape index: {}]   ;;  %s1144_s8 = inlined_call_operand.vmem [shape: f32[128,128], index: 8, kind: input, shape index: {}]   ;;  %s1145_s9 = inlined_call_operand.vmem [shape: f32[1,128], index: 9, kind: input, shape index: {}]   ;;  %s1146_s10 = inlined_call_operand.hbm [shape: f32[8,128], index: 10, kind: output, shape index: {0}]   ;;  %s1147_s11 = inlined_call_operand.vmem [shape: f32[8,256], index: 11, kind: output, shape index: {1}]  }
   0x1   :  { %v39_v0 = vld [vmem:[%s1138_s2] sm:$0xff]  ;;  %v40_v1 = vld [vmem:[%s1138_s2 + $0x8] sm:$0xff]  ;;  %v41_v2 = vld [vmem:[%s1138_s2 + $0x10] sm:$0xff]  ;;  %625 = vmatprep.subr.bf16.mxu0 %v765_v3  ;;  %552 = vmatprep.mubr.msk.f32.mxu0 %vm766_vm0, %v767_v6 }
   0x2   :  { %v626_v4 = vpack.c.bf16 %v40_v1, %v39_v0  ;;  %v42_v5 = vld [vmem:[%s1138_s2 + $0x18] sm:$0xff]  ;;  %241 = vmatprep.mubr.f32.mxu1 %v767_v6  ;;  %v43_v8 = vld [vmem:[%s1138_s2 + $0x20] sm:$0xff]  ;;  %v44_v9 = vld [vmem:[%s1138_s2 + $0x28] sm:$0xff] }
   0x3   :  { %v629_v7 = vpack.c.bf16 %v42_v5, %v41_v2  ;;  %v134_v10 = vld [vmem:[%s1140_s4 + $0x8] sm:$0xff]  ;;  %v45_v11 = vld [vmem:[%s1138_s2 + $0x30] sm:$0xff]  ;;  %v46_v12 = vld [vmem:[%s1138_s2 + $0x38] sm:$0xff]  ;;  %v632_v16 = vpack.c.bf16 %v44_v9, %v43_v8 }
   0x4   :  { %627 = vmatpush3.bf16.msra.mxu0 %v626_v4  ;;  %v136_v13 = vld [vmem:[%s1140_s4 + $0x18] sm:$0xff]  ;;  %v133_v14 = vld [vmem:[%s1140_s4] sm:$0xff]  ;;  %v135_v15 = vld [vmem:[%s1140_s4 + $0x10] sm:$0xff]  ;;  %v635_v28 = vpack.c.bf16 %v46_v12, %v45_v11 }
   0x5   :  { %628 = vmatprep.subr.bf16.mxu0 %v765_v3  ;;  %v649_v17 = vpack.c.bf16 %v136_v13, %v134_v10  ;;  %v651_v18 = vpack.c.bf16 %v135_v15, %v133_v14  ;;  %v138_v19 = vld [vmem:[%s1140_s4 + $0x28] sm:$0xff]  ;;  %v140_v20 = vld [vmem:[%s1140_s4 + $0x38] sm:$0xff]  ;;  %v137_v21 = vld [vmem:[%s1140_s4 + $0x20] sm:$0xff] }
   0x6   :  { %v653_v22 = vpack.c.bf16 %v140_v20, %v138_v19  ;;  %v139_v23 = vld [vmem:[%s1140_s4 + $0x30] sm:$0xff]  ;;  %v142_v24 = vld [vmem:[%s1140_s4 + $0x48] sm:$0xff]  ;;  %v144_v25 = vld [vmem:[%s1140_s4 + $0x58] sm:$0xff] }
   0x7   :  { %650 = vmatprep.subr.bf16.mxu1 %v649_v17  ;;  %v47_v26 = vld [vmem:[%s1138_s2 + $0x40] sm:$0xff]  ;;  %v655_v27 = vpack.c.bf16 %v139_v23, %v137_v21  ;;  %v48_v29 = vld [vmem:[%s1138_s2 + $0x48] sm:$0xff]  ;;  %v657_v30 = vpack.c.bf16 %v144_v25, %v142_v24  ;;  %v143_v32 = vld [vmem:[%s1140_s4 + $0x50] sm:$0xff] }
   0x8   :  { %630 = vmatpush3.bf16.msra.mxu0 %v629_v7  ;;  %652 = vmatpush1.bf16.msra.mxu1 %v651_v18  ;;  %v141_v31 = vld [vmem:[%s1140_s4 + $0x40] sm:$0xff]  ;;  %v146_v33 = vld [vmem:[%s1140_s4 + $0x68] sm:$0xff]  ;;  %v148_v34 = vld [vmem:[%s1140_s4 + $0x78] sm:$0xff] }
   0x9   :  { %631 = vmatprep.subr.bf16.mxu0 %v765_v3  ;;  %654 = vmatprep.subr.bf16.mxu1 %v653_v22 }
   0xc   :  { %633 = vmatpush3.bf16.msra.mxu0 %v632_v16 }
   0xd   :  { %634 = vmatprep.subr.bf16.mxu0 %v765_v3 }
   0xe   :  { %17 = vsyncpa [#allocation3], 0  ;;  %656 = vmatpush1.bf16.msra.mxu1 %v655_v27  ;;  %v659_v35 = vpack.c.bf16 %v143_v32, %v141_v31  ;;  %v638_v36 = vpack.c.bf16 %v48_v29, %v47_v26  ;;  %v49_v37 = vld [vmem:[%s1138_s2 + $0x50] sm:$0xff]  ;;  %v661_v38 = vpack.c.bf16 %v148_v34, %v146_v33  ;;  %v145_v39 = vld [vmem:[%s1140_s4 + $0x60] sm:$0xff] }
   0xf   :  { %658 = vmatprep.subr.bf16.mxu1 %v657_v30  ;;  %v147_v40 = vld [vmem:[%s1140_s4 + $0x70] sm:$0xff]  ;;  %v50_v41 = vld [vmem:[%s1138_s2 + $0x58] sm:$0xff]  ;;  %v150_v42 = vld [vmem:[%s1140_s4 + $0x88] sm:$0xff] }
  0x10   :  { %636 = vmatpush3.bf16.msra.mxu0 %v635_v28  ;;  %v152_v43 = vld [vmem:[%s1140_s4 + $0x98] sm:$0xff]  ;;  %v663_v44 = vpack.c.bf16 %v147_v40, %v145_v39  ;;  %v641_v45 = vpack.c.bf16 %v50_v41, %v49_v37  ;;  %v149_v47 = vld [vmem:[%s1140_s4 + $0x80] sm:$0xff]  ;;  %v151_v48 = vld [vmem:[%s1140_s4 + $0x90] sm:$0xff] }
  0x11   :  { %637 = vmatprep.subr.bf16.mxu0 %v765_v3  ;;  %v665_v46 = vpack.c.bf16 %v152_v43, %v150_v42  ;;  %v51_v49 = vld [vmem:[%s1138_s2 + $0x60] sm:$0xff]  ;;  %v52_v50 = vld [vmem:[%s1138_s2 + $0x68] sm:$0xff]  ;;  %v667_v51 = vpack.c.bf16 %v151_v48, %v149_v47  ;;  %v53_v53 = vld [vmem:[%s1138_s2 + $0x70] sm:$0xff] }
  0x12   :  { %660 = vmatpush1.bf16.msra.mxu1 %v659_v35  ;;  %v644_v52 = vpack.c.bf16 %v52_v50, %v51_v49  ;;  %v54_v54 = vld [vmem:[%s1138_s2 + $0x78] sm:$0xff]  ;;  %v38_v56 = vld [vmem:[%s1136_s0] sm:$0xff]  ;;  %v154_v57 = vld [vmem:[%s1140_s4 + $0xa8] sm:$0xff] }
  0x13   :  { %662 = vmatprep.subr.bf16.mxu1 %v661_v38  ;;  %v647_v55 = vpack.c.bf16 %v54_v54, %v53_v53  ;;  %v156_v58 = vld [vmem:[%s1140_s4 + $0xb8] sm:$0xff]  ;;  %v153_v60 = vld [vmem:[%s1140_s4 + $0xa0] sm:$0xff]  ;;  %v155_v61 = vld [vmem:[%s1140_s4 + $0xb0] sm:$0xff] }
  0x14   :  { %639 = vmatpush3.bf16.msra.mxu0 %v638_v36  ;;  %v669_v59 = vpack.c.bf16 %v156_v58, %v154_v57  ;;  %v671_v62 = vpack.c.bf16 %v155_v61, %v153_v60  ;;  %v158_v63 = vld [vmem:[%s1140_s4 + $0xc8] sm:$0xff]  ;;  %v160_v0 = vld [vmem:[%s1140_s4 + $0xd8] sm:$0xff]  ;;  %v157_v1 = vld [vmem:[%s1140_s4 + $0xc0] sm:$0xff] }
  0x15   :  { %640 = vmatprep.subr.bf16.mxu0 %v765_v3  ;;  %v673_v2 = vpack.c.bf16 %v160_v0, %v158_v63  ;;  %v159_v4 = vld [vmem:[%s1140_s4 + $0xd0] sm:$0xff]  ;;  %v162_v5 = vld [vmem:[%s1140_s4 + $0xe8] sm:$0xff]  ;;  %v164_v7 = vld [vmem:[%s1140_s4 + $0xf8] sm:$0xff] }
  0x16   :  { %664 = vmatpush1.bf16.msra.mxu1 %v663_v44  ;;  %v675_v8 = vpack.c.bf16 %v159_v4, %v157_v1  ;;  %v677_v9 = vpack.c.bf16 %v164_v7, %v162_v5  ;;  %v161_v10 = vld [vmem:[%s1140_s4 + $0xe0] sm:$0xff]  ;;  %v163_v11 = vld [vmem:[%s1140_s4 + $0xf0] sm:$0xff]  ;;  %v255_v14 = vld [vmem:[%s1142_s6 + $0x8] sm:$0xff] }
  0x17   :  { %666 = vmatprep.subr.bf16.mxu1 %v665_v46  ;;  %v679_v12 = vpack.c.bf16 %v163_v11, %v161_v10  ;;  %v254_v13 = vld [vmem:[%s1142_s6] sm:$0xff]  ;;  %v256_v15 = vld [vmem:[%s1142_s6 + $0x10] sm:$0xff]  ;;  %v257_v17 = vld [vmem:[%s1142_s6 + $0x18] sm:$0xff] }
  0x18   :  { %642 = vmatpush3.bf16.msra.mxu0 %v641_v45  ;;  %v682_v16 = vpack.c.bf16 %v255_v14, %v254_v13  ;;  %v685_v18 = vpack.c.bf16 %v257_v17, %v256_v15  ;;  %v466_v19 = vld [vmem:[%s1139_s3] ss:$0 sm:$0xff]  ;;  %v259_v25 = vld [vmem:[%s1142_s6 + $0x28] sm:$0xff]  ;;  %v260_v27 = vld [vmem:[%s1142_s6 + $0x30] sm:$0xff] }
  0x19   :  { %643 = vmatprep.subr.bf16.mxu0 %v765_v3  ;;  %v258_v24 = vld [vmem:[%s1142_s6 + $0x20] sm:$0xff]  ;;  %v263_v30 = vld [vmem:[%s1142_s6 + $0x48] sm:$0xff]  ;;  %v264_v32 = vld [vmem:[%s1142_s6 + $0x50] sm:$0xff] }
  0x1a   :  { %668 = vmatpush1.bf16.msra.mxu1 %v667_v51  ;;  %v688_v26 = vpack.c.bf16 %v259_v25, %v258_v24  ;;  %v262_v29 = vld [vmem:[%s1142_s6 + $0x40] sm:$0xff]  ;;  %v265_v33 = vld [vmem:[%s1142_s6 + $0x58] sm:$0xff]  ;;  %v267_v36 = vld [vmem:[%s1142_s6 + $0x68] sm:$0xff] }
  0x1b   :  { %670 = vmatprep.subr.bf16.mxu1 %v669_v59  ;;  %v694_v31 = vpack.c.bf16 %v263_v30, %v262_v29  ;;  %v697_v34 = vpack.c.bf16 %v265_v33, %v264_v32  ;;  %v266_v35 = vld [vmem:[%s1142_s6 + $0x60] sm:$0xff]  ;;  %v268_v38 = vld [vmem:[%s1142_s6 + $0x70] sm:$0xff]  ;;  %v269_v39 = vld [vmem:[%s1142_s6 + $0x78] sm:$0xff] }
  0x1c   :  { %645 = vmatpush3.bf16.msra.mxu0 %v644_v52  ;;  %v700_v37 = vpack.c.bf16 %v267_v36, %v266_v35  ;;  %v703_v40 = vpack.c.bf16 %v269_v39, %v268_v38  ;;  %v348_v41 = vld [vmem:[%s1144_s8] sm:$0xff]  ;;  %v349_v42 = vld [vmem:[%s1144_s8 + $0x8] sm:$0xff]  ;;  %v350_v43 = vld [vmem:[%s1144_s8 + $0x10] sm:$0xff] }
  0x1d   :  { %646 = vmatprep.subr.bf16.mxu0 %v765_v3  ;;  %v706_v44 = vpack.c.bf16 %v349_v42, %v348_v41  ;;  %v351_v45 = vld [vmem:[%s1144_s8 + $0x18] sm:$0xff]  ;;  %v352_v47 = vld [vmem:[%s1144_s8 + $0x20] sm:$0xff]  ;;  %v353_v48 = vld [vmem:[%s1144_s8 + $0x28] sm:$0xff] }
  0x1e   :  { %672 = vmatpush1.bf16.msra.mxu1 %v671_v62  ;;  %v709_v46 = vpack.c.bf16 %v351_v45, %v350_v43  ;;  %v712_v49 = vpack.c.bf16 %v353_v48, %v352_v47  ;;  %v354_v50 = vld [vmem:[%s1144_s8 + $0x30] sm:$0xff]  ;;  %v355_v51 = vld [vmem:[%s1144_s8 + $0x38] sm:$0xff]  ;;  %v356_v53 = vld [vmem:[%s1144_s8 + $0x40] sm:$0xff] }
  0x1f   :  { %674 = vmatprep.subr.bf16.mxu1 %v673_v2  ;;  %v715_v52 = vpack.c.bf16 %v355_v51, %v354_v50  ;;  %v357_v54 = vld [vmem:[%s1144_s8 + $0x48] sm:$0xff]  ;;  %v165_v59 = vld [vmem:[%s1141_s5] sm:$0x3]  ;;  %v358_v11 = vld [vmem:[%s1144_s8 + $0x50] sm:$0xff] }
  0x20   :  { %648 = vmatpush3.bf16.msra.mxu0 %v647_v55  ;;  %v718_v55 = vpack.c.bf16 %v357_v54, %v356_v53  ;;  %v251_v7 = vld [vmem:[%s1137_s1] sm:$0xff]  ;;  %v361_v15 = vld [vmem:[%s1144_s8 + $0x68] sm:$0xff]  ;;  %v362_v17 = vld [vmem:[%s1144_s8 + $0x70] sm:$0xff] }
  0x21   :  { %681 = vmatprep.subr.bf16.mxu0 %v765_v3  ;;  %v360_v14 = vld [vmem:[%s1144_s8 + $0x60] sm:$0xff] }
  0x22   :  { %676 = vmatpush1.bf16.msra.mxu1 %v675_v8  ;;  %v468_v25 = vld [vmem:[%s1145_s9] ss:$0 sm:$0xff] }
  0x23   :  { %553 = vmatmul.mubr.f32.vlgmr.msra.gmra.mrb[0].mxu0 %v38_v56  ;;  %678 = vmatprep.subr.bf16.mxu1 %v677_v9  ;;  %v167_v56 = vlaneseq }
  0x24   :  { %587 = vmatprep.mubr.msk.f32.mxu0 %vm766_vm0, %v767_v6  ;;  %683 = vmatpush3.bf16.msra.mxu0 %v682_v16  ;;  %v724_v16 = vpack.c.bf16 %v361_v15, %v360_v14 }
  0x25   :  { %684 = vmatprep.subr.bf16.mxu0 %v765_v3  ;;  %v168_v57 = vshrl.u32 %v167_v56, 7 }
  0x26   :  { %680 = vmatpush1.bf16.msra.mxu1 %v679_v12  ;;  %v359_v12 = vld [vmem:[%s1144_s8 + $0x58] sm:$0xff] }
  0x27   :  { %705 = vmatprep.subr.bf16.mxu1 %v765_v3  ;;  %v169_v58 = vsub.s32 0, %v168_v57  ;;  %v173_v60 = vsub.s32 1, %v168_v57  ;;  %v721_v13 = vpack.c.bf16 %v359_v12, %v358_v11 }
  0x28   :  { %686 = vmatpush3.bf16.msra.mxu0 %v685_v18  ;;  %v363_v18 = vld [vmem:[%s1144_s8 + $0x78] sm:$0xff]  ;;  %s768_s8 = smov [#allocation2]  }
  0x29   :  { %687 = vmatprep.subr.bf16.mxu0 %v765_v3  ;;  %v170_v61 = vrot.slane %v165_v59, %v169_v58  ;;  %v174_v62 = vrot.slane %v165_v59, %v173_v60  ;;  %s454_s20 = sshll.u32 %s768_s8, 4  ;;  %s455_s20 = int_to_ptr.vmem [resolvable:$true] %s454_s20 }
  0x2a   :  { %p746_p1 = scmp.lt.s32.totalorder %s455_s20, %s455_s20 }
  0x2c   :  { %689 = vmatpush3.bf16.msra.mxu0 %v688_v26 }
  0x2d   :  { %690 = vmatprep.subr.bf16.mxu0 %v765_v3 }
  0xf6   :  { %v128_v20 = vpop.f32.mrb[0].mxu0 }
  0xf7   :  { %v129_v21 = vadd.f32 %v466_v19, %v128_v20  ;;  %v554_v22 = vpop.f32.mrb[1].mxu0  ;;  %v727_v19 = vpack.c.bf16 %v363_v18, %v362_v17  ;;  %v467_v20 = vld [vmem:[%s1143_s7] ss:$0 sm:$0xff]  ;;  %s741_s7 = scalar_lea.vmem %s455_s20, 128 }
  0xf8   :  { %p742_p0 = scmp.ne.s32.totalorder %s455_s20, %s741_s7  ;;  %p747_p2 = scmp.lt.s32.totalorder %s741_s7, %s741_s7 }
  0xf9   :  { %733 = vtanh.f32 %v129_v21 }
  0xfa   :  { %p748_p3 = por %p747_p2, %p746_p1 }
  0xfc   :  { %p749_p4 = pnand %p748_p3, %p742_p0 }
 0x103   :  { %v734_v23 = vpop.eup %733 }
 0x104   :  { %242 = vmatmul.mubr.f32.vlgmr.msra.gmra.mrb[0].mxu1 %v734_v23 }
 0x105   :  { %622 = vmatprep.mubr.msk.f32.mxu1 %vm766_vm0, %v767_v6  ;;  %v261_v6 = vld [vmem:[%s1142_s6 + $0x38] sm:$0xff]  ;;  %707 = vmatpush3.bf16.msra.mxu1 %v706_v44 }
 0x106   :  { %v691_v28 = vpack.c.bf16 %v261_v6, %v260_v27  ;;  %708 = vmatprep.subr.bf16.mxu1 %v765_v3 }
 0x108   :  { %692 = vmatpush3.bf16.msra.mxu0 %v691_v28 }
 0x109   :  { %693 = vmatprep.subr.bf16.mxu0 %v765_v3  ;;  %710 = vmatpush3.bf16.msra.mxu1 %v709_v46 }
 0x10a   :  { %711 = vmatprep.subr.bf16.mxu1 %v765_v3 }
 0x10c   :  { %695 = vmatpush3.bf16.msra.mxu0 %v694_v31 }
 0x10d   :  { %696 = vmatprep.subr.bf16.mxu0 %v765_v3  ;;  %713 = vmatpush3.bf16.msra.mxu1 %v712_v49 }
 0x10e   :  { %714 = vmatprep.subr.bf16.mxu1 %v765_v3 }
 0x110   :  { %698 = vmatpush3.bf16.msra.mxu0 %v697_v34 }
 0x111   :  { %699 = vmatprep.subr.bf16.mxu0 %v765_v3  ;;  %716 = vmatpush3.bf16.msra.mxu1 %v715_v52 }
 0x112   :  { %717 = vmatprep.subr.bf16.mxu1 %v765_v3 }
 0x114   :  { %701 = vmatpush3.bf16.msra.mxu0 %v700_v37 }
 0x115   :  { %702 = vmatprep.subr.bf16.mxu0 %v765_v3  ;;  %719 = vmatpush3.bf16.msra.mxu1 %v718_v55 }
 0x116   :  { %720 = vmatprep.subr.bf16.mxu1 %v765_v3 }
 0x118   :  { %704 = vmatpush3.bf16.msra.mxu0 %v703_v40 }
 0x119   :  { %722 = vmatpush3.bf16.msra.mxu1 %v721_v13 }
 0x11a   :  { %723 = vmatprep.subr.bf16.mxu1 %v765_v3 }
 0x11d   :  { %725 = vmatpush3.bf16.msra.mxu1 %v724_v16 }
 0x11e   :  { %726 = vmatprep.subr.bf16.mxu1 %v765_v3 }
 0x121   :  { %728 = vmatpush3.bf16.msra.mxu1 %v727_v19 }
 0x1d7   :  { %v243_v63 = vpop.f32.mrb[0].mxu1 }
 0x1d8   :  { %v244_v0 = vadd.f32 %v243_v63, %v170_v61  ;;  %v245_v1 = vpop.f32.mrb[1].mxu1 }
 0x1d9   :  { %v246_v2 = vadd.f32 %v245_v1, %v174_v62 }
 0x1da   :  { %446 = vst [vmem:[%s1147_s11] sm:$0xff] %v244_v0 }
 0x1db   :  { %v248_v4 = vmul.f32 0.5, %v246_v2  ;;  %447 = vst [vmem:[%s1147_s11 + $0x8] sm:$0xff] %v246_v2 }
 0x1dd   :  { %v249_v5 = vmul.f32 1.442695, %v248_v4 }
 0x1df   :  { %735 = vpow2.f32 %v249_v5 }
 0x1e9   :  { %v736_v8 = vpop.eup %735 }
 0x1ea   :  { %v252_v9 = vmul.f32 %v736_v8, %v251_v7 }
 0x1ec   :  { %v253_v10 = vadd.f32 %v252_v9, %v244_v0 }
 0x1ee   :  { %588 = vmatmul.mubr.f32.vlgmr.msra.gmra.mrb[2].mxu0 %v253_v10 }
 0x2c1   :  { %v343_v21 = vpop.f32.mrb[2].mxu0 }
 0x2c2   :  { %v344_v22 = vadd.f32 %v467_v20, %v343_v21  ;;  %v589_v23 = vpop.f32.mrb[3].mxu0 }
 0x2c4   :  { %737 = vtanh.f32 %v344_v22 }
 0x2ce   :  { %v738_v24 = vpop.eup %737 }
 0x2cf   :  { %623 = vmatmul.mubr.f32.vlgmr.msra.gmra.mrb[2].mxu1 %v738_v24 }
 0x3a2   :  { %v437_v26 = vpop.f32.mrb[2].mxu1 }
 0x3a3   :  { %v438_v27 = vadd.f32 %v468_v25, %v437_v26  ;;  %v624_v6 = vpop.f32.mrb[3].mxu1 }
 0x3a5   :  { %v441_v28 = vmul.f32 0.5, %v438_v27 }
 0x3a7   :  { %739 = vtanh.f32 %v441_v28 }
 0x3b1   :  { %v740_v3 = vpop.eup %739 }
 0x3b2   :  { %v443_v29 = vadd.f32 1.0, %v740_v3 }
 0x3b4   :  { %v444_v30 = vmul.f32 0.5, %v443_v29 }
 0x3b6   :  { %445 = vst [vmem:[#allocation2] sm:$0xff] %v444_v30 }
 0x3b7   :  { %752 = shalt.err (!%p749_p4)
}
 0x3b8   :  { %s753_s4 = scalar_lea.hbm %s1146_s10, 128 }
 0x3b9   :  { %p754_p5 = scmp.ne.s32.totalorder %s1146_s10, %s753_s4  ;;  %p757_p6 = scmp.lt.u32.totalorder %s753_s4, %s1146_s10 }
 0x3bb   :  { %p759_p7 = pnand %p757_p6, %p754_p5 }
 0x3bd   :  { %762 = shalt.err (!%p759_p7)
}
 0x3be   :  { %457 = dma.vmem_to_hbm [thread:$0]  %s455_s20, 128, %s1146_s10, [#allocation3]  }
 0x3bf   :  { %763 = dma.done.wait [#allocation3], 128  }
 0x3c0   :  { %764 = vsyncadd [#allocation3], 4294967168 }
 0x3c1   :  { %465 = vsyncpa [#allocation3], 1 }

</bundles_post_ra>
